<compile_context>
chip_gen: v7x
topology: tpu7x:2x2x1
jax: 0.10.0
libtpu: 0.0.40
codegen_flags: <defaults>
</compile_context>

<pallas_src>
import functools

import jax
import jax.numpy as jnp
from jax import lax
from jax.experimental import pallas as pl
from jax.experimental.pallas import tpu as pltpu


# ----------------------------- Pallas kernel ------------------------------ #
def lstm_fc_kernel(x_ref, wih_ref, whh_ref, b_ref, fcw_ref, fcb_ref, o_ref,
                   xg_ref, h_ref, *, hidden_dim, seq_len, batch):
    """Fused LSTM recurrence + Linear, time-major flattened rows.

    x_ref  : (T*Bp, E)   embeddings (row = t*Bp + b)
    wih_ref: (E, 4H)     input->gate weights, gate order [i, f, o, g]
    whh_ref: (H, 4H)     hidden->gate weights, gate order [i, f, o, g]
    b_ref  : (1, 4H)     combined bias b_ih + b_hh, gate order [i, f, o, g]
    fcw_ref: (H, Cp)     FC weight, output lane-padded to Cp (mult of 128)
    fcb_ref: (1, Cp)     FC bias, lane-padded
    o_ref  : (T*Bp, Cp)  logits output
    xg_ref : (T*Bp, 4H)  VMEM scratch: precomputed x @ W_ih + b
    h_ref  : (T*Bp, H)   VMEM scratch: per-step hidden states
    PyTorch LSTM semantics, h0 = c0 = 0.
    """
    H, T, Bp = hidden_dim, seq_len, batch

    whh = whh_ref[...]

    # (1) Hoisted input projection for all timesteps: one large MXU matmul,
    #     bias broadcast added exactly once (outside the recurrence).
    xg_ref[...] = (jnp.dot(x_ref[...], wih_ref[...],
                           preferred_element_type=jnp.float32)
                   + b_ref[...])

    # (2) Sequential recurrence: only h @ W_hh + elementwise per step.
    #     Fully unrolled (T static & small) -> static, aligned row slices.
    # TODO(synk): for long sequences, chunk the unroll / move T onto an
    # 'arbitrary' grid axis with h/c carried in scratch (v7x 64 MiB VMEM).
    h = jnp.zeros((Bp, H), jnp.float32)
    c = jnp.zeros((Bp, H), jnp.float32)
    for t in range(T):
        rows = pl.ds(t * Bp, Bp)
        gates = xg_ref[rows, :] + jnp.dot(
            h, whh, preferred_element_type=jnp.float32)        # (Bp, 4H)
        sig = jax.nn.sigmoid(gates[:, :3 * H])                 # [i, f, o]
        g_g = jnp.tanh(gates[:, 3 * H:])                       # [g]
        c = sig[:, H:2 * H] * c + sig[:, :H] * g_g
        h = sig[:, 2 * H:3 * H] * jnp.tanh(c)
        h_ref[rows, :] = h

    # (3) FC hoisted out of the loop: one large matmul + one lane-dense
    #     bulk store of the whole (T*Bp, Cp) output.
    o_ref[...] = (jnp.dot(h_ref[...], fcw_ref[...],
                          preferred_element_type=jnp.float32)
                  + fcb_ref[...]).astype(o_ref.dtype)


# ------------------------------ JAX wrapper -------------------------------- #
def re_net_forward(token_ids, params):
    emb = params["embedding"]                    # (V, E)
    x = emb[token_ids].astype(jnp.float32)       # (B, T, E) -- glue gather
    B, T, E = x.shape
    H = params["w_hh"].shape[0]
    C = params["fc_w"].shape[1]

    Bp = ((B + 7) // 8) * 8                      # sublane-pad batch
    Cp = ((C + 127) // 128) * 128                # lane-pad FC output

    # Time-major, batch-padded, flattened to 2-D rows (row = t*Bp + b).
    x_tm = jnp.swapaxes(x, 0, 1)                 # (T, B, E)
    if Bp != B:
        x_tm = jnp.pad(x_tm, ((0, 0), (0, Bp - B), (0, 0)))
    x_2d = x_tm.reshape(T * Bp, E)

    # Reorder gate columns [i, f, g, o] -> [i, f, o, g] (wrapper-side, so the
    # kernel applies sigmoid to one contiguous 3H slice and tanh to the rest).
    def reorder(w):
        return jnp.concatenate(
            [w[..., :2 * H], w[..., 3 * H:4 * H], w[..., 2 * H:3 * H]],
            axis=-1)

    w_ih = reorder(params["w_ih"])                              # (E, 4H)
    w_hh = reorder(params["w_hh"])                              # (H, 4H)
    b = reorder(params["b_ih"] + params["b_hh"]).reshape(1, 4 * H)

    fc_w = jnp.zeros((H, Cp), jnp.float32).at[:, :C].set(params["fc_w"])
    fc_b = jnp.zeros((1, Cp), jnp.float32).at[0, :C].set(params["fc_b"])

    kernel = functools.partial(lstm_fc_kernel, hidden_dim=H, seq_len=T,
                               batch=Bp)

    def full_spec(shape):
        nd = len(shape)
        return pl.BlockSpec(shape, lambda i, nd=nd: (0,) * nd)

    # TODO(synk): on v7x, a leading 'parallel' grid axis over independent
    # batch groups would use both TensorCores; pointless at B=2.
    out_2d = pl.pallas_call(
        kernel,
        out_shape=jax.ShapeDtypeStruct((T * Bp, Cp), jnp.float32),
        grid_spec=pltpu.PrefetchScalarGridSpec(
            num_scalar_prefetch=0,
            grid=(1,),
            in_specs=[
                full_spec(x_2d.shape),
                full_spec(w_ih.shape),
                full_spec(w_hh.shape),
                full_spec(b.shape),
                full_spec(fc_w.shape),
                full_spec(fc_b.shape),
            ],
            out_specs=full_spec((T * Bp, Cp)),
            scratch_shapes=[
                pltpu.VMEM((T * Bp, 4 * H), jnp.float32),   # precomputed gates
                pltpu.VMEM((T * Bp, H), jnp.float32),       # hidden states
            ]),
        compiler_params=pltpu.CompilerParams(
            dimension_semantics=("arbitrary",)),
    )(x_2d, w_ih, w_hh, b, fc_w, fc_b)

    out = out_2d.reshape(T, Bp, Cp)[:, :B, :C]   # strip padding -> (T, B, C)
    return jnp.swapaxes(out, 0, 1)               # (B, T, C)


# -------------------------- deterministic params --------------------------- #
def init_params(key, vocab_size, num_classes, hidden_dim, embedding_dim):
    ks = jax.random.split(key, 6)
    # embedding.weight.data.uniform_(-1, 1)
    embedding = jax.random.uniform(ks[0], (vocab_size, embedding_dim),
                                   jnp.float32, -1.0, 1.0)
    # PyTorch LSTM default init: U(-1/sqrt(H), 1/sqrt(H)).
    # PyTorch stores weight_ih as (4H, E); we keep the transposed (E, 4H)
    # layout so the kernel right-multiplies. Gate order is [i, f, g, o].
    bound = 1.0 / float(hidden_dim) ** 0.5
    w_ih = jax.random.uniform(ks[1], (embedding_dim, 4 * hidden_dim),
                              jnp.float32, -bound, bound)
    w_hh = jax.random.uniform(ks[2], (hidden_dim, 4 * hidden_dim),
                              jnp.float32, -bound, bound)
    b_ih = jax.random.uniform(ks[3], (4 * hidden_dim,), jnp.float32,
                              -bound, bound)
    b_hh = jax.random.uniform(ks[4], (4 * hidden_dim,), jnp.float32,
                              -bound, bound)
    # fc: xavier_uniform_(gain=1), bias = 0
    xav = (6.0 / (hidden_dim + num_classes)) ** 0.5
    fc_w = jax.random.uniform(ks[5], (hidden_dim, num_classes), jnp.float32,
                              -xav, xav)
    fc_b = jnp.zeros((num_classes,), jnp.float32)
    return dict(embedding=embedding, w_ih=w_ih, w_hh=w_hh,
                b_ih=b_ih, b_hh=b_hh, fc_w=fc_w, fc_b=fc_b)


# --------------------------- pure-JAX reference ----------------------------- #
def re_net_ref(token_ids, params):
    x = params["embedding"][token_ids]                        # (B, T, E)
    B = x.shape[0]
    H = params["w_hh"].shape[0]
    b = params["b_ih"] + params["b_hh"]

    def step(carry, x_t):
        h, c = carry
        gates = x_t @ params["w_ih"] + h @ params["w_hh"] + b
        i = jax.nn.sigmoid(gates[:, :H])
        f = jax.nn.sigmoid(gates[:, H:2 * H])
        g = jnp.tanh(gates[:, 2 * H:3 * H])
        o = jax.nn.sigmoid(gates[:, 3 * H:])
        c = f * c + i * g
        h = o * jnp.tanh(c)
        return (h, c), h

    h0 = jnp.zeros((B, H), jnp.float32)
    _, hs = lax.scan(step, (h0, h0), jnp.swapaxes(x, 0, 1))
    hs = jnp.swapaxes(hs, 0, 1)                               # (B, T, H)
    return hs @ params["fc_w"] + params["fc_b"]


# ---------------------------------- main ----------------------------------- #
if __name__ == "__main__":
    vocab_size, num_classes = 50, 7
    hidden_dim, embedding_dim = 16, 32
    B, T = 2, 8

    key = jax.random.PRNGKey(0)
    pkey, dkey = jax.random.split(key)
    params = init_params(pkey, vocab_size, num_classes, hidden_dim,
                         embedding_dim)
    token_ids = jax.random.randint(dkey, (B, T), 0, vocab_size, jnp.int32)

    out = re_net_forward(token_ids, params)
    out = jax.block_until_ready(out)

    ref = re_net_ref(token_ids, params)
    assert out.shape == (B, T, num_classes)
    assert jnp.allclose(out, ref, atol=1e-5, rtol=1e-5)

    print("KERNEL_OK")
</pallas_src>

<mosaic_0001>
module attributes {stable_mosaic.version = 11 : i64} {
  func.func @lstm_fc_kernel(%arg0: i32, %arg1: memref<64x32xf32, #tpu.memory_space<vmem>>, %arg2: memref<32x64xf32, #tpu.memory_space<vmem>>, %arg3: memref<16x64xf32, #tpu.memory_space<vmem>>, %arg4: memref<1x64xf32, #tpu.memory_space<vmem>>, %arg5: memref<16x128xf32, #tpu.memory_space<vmem>>, %arg6: memref<1x128xf32, #tpu.memory_space<vmem>>, %arg7: memref<64x128xf32, #tpu.memory_space<vmem>>, %arg8: memref<64x64xf32, #tpu.memory_space<vmem>>, %arg9: memref<64x16xf32, #tpu.memory_space<vmem>>) attributes {dimension_semantics = [#tpu.dimension_semantics<arbitrary>], iteration_bounds = array<i64: 1>, scalar_prefetch = 0 : i64, scratch_operands = 2 : i64, tpu.core_type = #tpu.core_type<tc>, window_params = [{pipeline_mode = #tpu.pipeline_mode<synchronous>, transform_indices = @transform_0, window_bounds = array<i64: 64, 32>}, {pipeline_mode = #tpu.pipeline_mode<synchronous>, transform_indices = @transform_1, window_bounds = array<i64: 32, 64>}, {pipeline_mode = #tpu.pipeline_mode<synchronous>, transform_indices = @transform_2, window_bounds = array<i64: 16, 64>}, {pipeline_mode = #tpu.pipeline_mode<synchronous>, transform_indices = @transform_3, window_bounds = array<i64: 1, 64>}, {pipeline_mode = #tpu.pipeline_mode<synchronous>, transform_indices = @transform_4, window_bounds = array<i64: 16, 128>}, {pipeline_mode = #tpu.pipeline_mode<synchronous>, transform_indices = @transform_5, window_bounds = array<i64: 1, 128>}, {pipeline_mode = #tpu.pipeline_mode<synchronous>, transform_indices = @transform_6, window_bounds = array<i64: 64, 128>}]} {
    %c0 = arith.constant 0 : index
    %c0_0 = arith.constant 0 : index
    %0 = vector.load %arg3[%c0, %c0_0] : memref<16x64xf32, #tpu.memory_space<vmem>>, vector<16x64xf32>
    %c0_1 = arith.constant 0 : index
    %c0_2 = arith.constant 0 : index
    %1 = vector.load %arg1[%c0_1, %c0_2] : memref<64x32xf32, #tpu.memory_space<vmem>>, vector<64x32xf32>
    %c0_3 = arith.constant 0 : index
    %c0_4 = arith.constant 0 : index
    %2 = vector.load %arg2[%c0_3, %c0_4] : memref<32x64xf32, #tpu.memory_space<vmem>>, vector<32x64xf32>
    %cst = arith.constant dense<0.000000e+00> : vector<64x64xf32>
    %3 = tpu.matmul %1, %2, %cst {dimension_numbers = #tpu.dot_dimension_numbers<[1], [0], [0], [1], [0, 0, 1, 1], [], []>} : vector<64x32xf32>, vector<32x64xf32>, vector<64x64xf32> -> vector<64x64xf32>
    %c0_5 = arith.constant 0 : index
    %c0_6 = arith.constant 0 : index
    %4 = vector.load %arg4[%c0_5, %c0_6] : memref<1x64xf32, #tpu.memory_space<vmem>>, vector<1x64xf32>
    %5 = vector.broadcast %4 : vector<1x64xf32> to vector<64x64xf32>
    %6 = arith.addf %3, %5 : vector<64x64xf32>
    %c0_7 = arith.constant 0 : index
    %c0_8 = arith.constant 0 : index
    %7 = vector.load %arg8[%c0_7, %c0_8] : memref<64x64xf32, #tpu.memory_space<vmem>>, vector<64x64xf32>
    tpu.vector_store %arg8[%c0_7, %c0_8], %6 {strides = array<i32>} : memref<64x64xf32, #tpu.memory_space<vmem>>, vector<64x64xf32>,
    %cst_9 = arith.constant 0.000000e+00 : f32
    %8 = vector.broadcast %cst_9 : f32 to vector<8x16xf32>
    %cst_10 = arith.constant 0.000000e+00 : f32
    %9 = vector.broadcast %cst_10 : f32 to vector<8x16xf32>
    %c0_11 = arith.constant 0 : index
    %c0_12 = arith.constant 0 : index
    %10 = vector.load %arg8[%c0_11, %c0_12] : memref<64x64xf32, #tpu.memory_space<vmem>>, vector<8x64xf32>
    %cst_13 = arith.constant dense<0.000000e+00> : vector<8x64xf32>
    %11 = tpu.matmul %8, %0, %cst_13 {dimension_numbers = #tpu.dot_dimension_numbers<[1], [0], [0], [1], [0, 0, 1, 1], [], []>} : vector<8x16xf32>, vector<16x64xf32>, vector<8x64xf32> -> vector<8x64xf32>
    %12 = arith.addf %10, %11 : vector<8x64xf32>
    %13 = vector.extract_strided_slice %12 {offsets = [0, 0], sizes = [8, 48], strides = [1, 1]} : vector<8x64xf32> to vector<8x48xf32>
    %14 = arith.negf %13 : vector<8x48xf32>
    %15 = math.exp %14 : vector<8x48xf32>
    %cst_14 = arith.constant 1.000000e+00 : f32
    %16 = vector.broadcast %cst_14 : f32 to vector<8x48xf32>
    %17 = arith.addf %16, %15 : vector<8x48xf32>
    %18 = arith.divf %16, %17 : vector<8x48xf32>
    %19 = vector.extract_strided_slice %12 {offsets = [0, 48], sizes = [8, 16], strides = [1, 1]} : vector<8x64xf32> to vector<8x16xf32>
    %20 = math.tanh %19 : vector<8x16xf32>
    %21 = vector.extract_strided_slice %18 {offsets = [0, 16], sizes = [8, 16], strides = [1, 1]} : vector<8x48xf32> to vector<8x16xf32>
    %22 = arith.mulf %21, %9 : vector<8x16xf32>
    %23 = vector.extract_strided_slice %18 {offsets = [0, 0], sizes = [8, 16], strides = [1, 1]} : vector<8x48xf32> to vector<8x16xf32>
    %24 = arith.mulf %23, %20 : vector<8x16xf32>
    %25 = arith.addf %22, %24 : vector<8x16xf32>
    %26 = vector.extract_strided_slice %18 {offsets = [0, 32], sizes = [8, 16], strides = [1, 1]} : vector<8x48xf32> to vector<8x16xf32>
    %27 = math.tanh %25 : vector<8x16xf32>
    %28 = arith.mulf %26, %27 : vector<8x16xf32>
    %c0_15 = arith.constant 0 : index
    %c0_16 = arith.constant 0 : index
    %29 = vector.load %arg9[%c0_15, %c0_16] : memref<64x16xf32, #tpu.memory_space<vmem>>, vector<8x16xf32>
    tpu.vector_store %arg9[%c0_15, %c0_16], %28 {strides = array<i32>} : memref<64x16xf32, #tpu.memory_space<vmem>>, vector<8x16xf32>,
    %c8 = arith.constant 8 : index
    %c0_17 = arith.constant 0 : index
    %30 = vector.load %arg8[%c8, %c0_17] : memref<64x64xf32, #tpu.memory_space<vmem>>, vector<8x64xf32>
    %cst_18 = arith.constant dense<0.000000e+00> : vector<8x64xf32>
    %31 = tpu.matmul %28, %0, %cst_18 {dimension_numbers = #tpu.dot_dimension_numbers<[1], [0], [0], [1], [0, 0, 1, 1], [], []>} : vector<8x16xf32>, vector<16x64xf32>, vector<8x64xf32> -> vector<8x64xf32>
    %32 = arith.addf %30, %31 : vector<8x64xf32>
    %33 = vector.extract_strided_slice %32 {offsets = [0, 0], sizes = [8, 48], strides = [1, 1]} : vector<8x64xf32> to vector<8x48xf32>
    %34 = arith.negf %33 : vector<8x48xf32>
    %35 = math.exp %34 : vector<8x48xf32>
    %cst_19 = arith.constant 1.000000e+00 : f32
    %36 = vector.broadcast %cst_19 : f32 to vector<8x48xf32>
    %37 = arith.addf %36, %35 : vector<8x48xf32>
    %38 = arith.divf %36, %37 : vector<8x48xf32>
    %39 = vector.extract_strided_slice %32 {offsets = [0, 48], sizes = [8, 16], strides = [1, 1]} : vector<8x64xf32> to vector<8x16xf32>
    %40 = math.tanh %39 : vector<8x16xf32>
    %41 = vector.extract_strided_slice %38 {offsets = [0, 16], sizes = [8, 16], strides = [1, 1]} : vector<8x48xf32> to vector<8x16xf32>
    %42 = arith.mulf %41, %25 : vector<8x16xf32>
    %43 = vector.extract_strided_slice %38 {offsets = [0, 0], sizes = [8, 16], strides = [1, 1]} : vector<8x48xf32> to vector<8x16xf32>
    %44 = arith.mulf %43, %40 : vector<8x16xf32>
    %45 = arith.addf %42, %44 : vector<8x16xf32>
    %46 = vector.extract_strided_slice %38 {offsets = [0, 32], sizes = [8, 16], strides = [1, 1]} : vector<8x48xf32> to vector<8x16xf32>
    %47 = math.tanh %45 : vector<8x16xf32>
    %48 = arith.mulf %46, %47 : vector<8x16xf32>
    %c8_20 = arith.constant 8 : index
    %c0_21 = arith.constant 0 : index
    %49 = vector.load %arg9[%c8_20, %c0_21] : memref<64x16xf32, #tpu.memory_space<vmem>>, vector<8x16xf32>
    tpu.vector_store %arg9[%c8_20, %c0_21], %48 {strides = array<i32>} : memref<64x16xf32, #tpu.memory_space<vmem>>, vector<8x16xf32>,
    %c16 = arith.constant 16 : index
    %c0_22 = arith.constant 0 : index
    %50 = vector.load %arg8[%c16, %c0_22] : memref<64x64xf32, #tpu.memory_space<vmem>>, vector<8x64xf32>
    %cst_23 = arith.constant dense<0.000000e+00> : vector<8x64xf32>
    %51 = tpu.matmul %48, %0, %cst_23 {dimension_numbers = #tpu.dot_dimension_numbers<[1], [0], [0], [1], [0, 0, 1, 1], [], []>} : vector<8x16xf32>, vector<16x64xf32>, vector<8x64xf32> -> vector<8x64xf32>
    %52 = arith.addf %50, %51 : vector<8x64xf32>
    %53 = vector.extract_strided_slice %52 {offsets = [0, 0], sizes = [8, 48], strides = [1, 1]} : vector<8x64xf32> to vector<8x48xf32>
    %54 = arith.negf %53 : vector<8x48xf32>
    %55 = math.exp %54 : vector<8x48xf32>
    %cst_24 = arith.constant 1.000000e+00 : f32
    %56 = vector.broadcast %cst_24 : f32 to vector<8x48xf32>
    %57 = arith.addf %56, %55 : vector<8x48xf32>
    %58 = arith.divf %56, %57 : vector<8x48xf32>
    %59 = vector.extract_strided_slice %52 {offsets = [0, 48], sizes = [8, 16], strides = [1, 1]} : vector<8x64xf32> to vector<8x16xf32>
    %60 = math.tanh %59 : vector<8x16xf32>
    %61 = vector.extract_strided_slice %58 {offsets = [0, 16], sizes = [8, 16], strides = [1, 1]} : vector<8x48xf32> to vector<8x16xf32>
    %62 = arith.mulf %61, %45 : vector<8x16xf32>
    %63 = vector.extract_strided_slice %58 {offsets = [0, 0], sizes = [8, 16], strides = [1, 1]} : vector<8x48xf32> to vector<8x16xf32>
    %64 = arith.mulf %63, %60 : vector<8x16xf32>
    %65 = arith.addf %62, %64 : vector<8x16xf32>
    %66 = vector.extract_strided_slice %58 {offsets = [0, 32], sizes = [8, 16], strides = [1, 1]} : vector<8x48xf32> to vector<8x16xf32>
    %67 = math.tanh %65 : vector<8x16xf32>
    %68 = arith.mulf %66, %67 : vector<8x16xf32>
    %c16_25 = arith.constant 16 : index
    %c0_26 = arith.constant 0 : index
    %69 = vector.load %arg9[%c16_25, %c0_26] : memref<64x16xf32, #tpu.memory_space<vmem>>, vector<8x16xf32>
    tpu.vector_store %arg9[%c16_25, %c0_26], %68 {strides = array<i32>} : memref<64x16xf32, #tpu.memory_space<vmem>>, vector<8x16xf32>,
    %c24 = arith.constant 24 : index
    %c0_27 = arith.constant 0 : index
    %70 = vector.load %arg8[%c24, %c0_27] : memref<64x64xf32, #tpu.memory_space<vmem>>, vector<8x64xf32>
    %cst_28 = arith.constant dense<0.000000e+00> : vector<8x64xf32>
    %71 = tpu.matmul %68, %0, %cst_28 {dimension_numbers = #tpu.dot_dimension_numbers<[1], [0], [0], [1], [0, 0, 1, 1], [], []>} : vector<8x16xf32>, vector<16x64xf32>, vector<8x64xf32> -> vector<8x64xf32>
    %72 = arith.addf %70, %71 : vector<8x64xf32>
    %73 = vector.extract_strided_slice %72 {offsets = [0, 0], sizes = [8, 48], strides = [1, 1]} : vector<8x64xf32> to vector<8x48xf32>
    %74 = arith.negf %73 : vector<8x48xf32>
    %75 = math.exp %74 : vector<8x48xf32>
    %cst_29 = arith.constant 1.000000e+00 : f32
    %76 = vector.broadcast %cst_29 : f32 to vector<8x48xf32>
    %77 = arith.addf %76, %75 : vector<8x48xf32>
    %78 = arith.divf %76, %77 : vector<8x48xf32>
    %79 = vector.extract_strided_slice %72 {offsets = [0, 48], sizes = [8, 16], strides = [1, 1]} : vector<8x64xf32> to vector<8x16xf32>
    %80 = math.tanh %79 : vector<8x16xf32>
    %81 = vector.extract_strided_slice %78 {offsets = [0, 16], sizes = [8, 16], strides = [1, 1]} : vector<8x48xf32> to vector<8x16xf32>
    %82 = arith.mulf %81, %65 : vector<8x16xf32>
    %83 = vector.extract_strided_slice %78 {offsets = [0, 0], sizes = [8, 16], strides = [1, 1]} : vector<8x48xf32> to vector<8x16xf32>
    %84 = arith.mulf %83, %80 : vector<8x16xf32>
    %85 = arith.addf %82, %84 : vector<8x16xf32>
    %86 = vector.extract_strided_slice %78 {offsets = [0, 32], sizes = [8, 16], strides = [1, 1]} : vector<8x48xf32> to vector<8x16xf32>
    %87 = math.tanh %85 : vector<8x16xf32>
    %88 = arith.mulf %86, %87 : vector<8x16xf32>
    %c24_30 = arith.constant 24 : index
    %c0_31 = arith.constant 0 : index
    %89 = vector.load %arg9[%c24_30, %c0_31] : memref<64x16xf32, #tpu.memory_space<vmem>>, vector<8x16xf32>
    tpu.vector_store %arg9[%c24_30, %c0_31], %88 {strides = array<i32>} : memref<64x16xf32, #tpu.memory_space<vmem>>, vector<8x16xf32>,
    %c32 = arith.constant 32 : index
    %c0_32 = arith.constant 0 : index
    %90 = vector.load %arg8[%c32, %c0_32] : memref<64x64xf32, #tpu.memory_space<vmem>>, vector<8x64xf32>
    %cst_33 = arith.constant dense<0.000000e+00> : vector<8x64xf32>
    %91 = tpu.matmul %88, %0, %cst_33 {dimension_numbers = #tpu.dot_dimension_numbers<[1], [0], [0], [1], [0, 0, 1, 1], [], []>} : vector<8x16xf32>, vector<16x64xf32>, vector<8x64xf32> -> vector<8x64xf32>
    %92 = arith.addf %90, %91 : vector<8x64xf32>
    %93 = vector.extract_strided_slice %92 {offsets = [0, 0], sizes = [8, 48], strides = [1, 1]} : vector<8x64xf32> to vector<8x48xf32>
    %94 = arith.negf %93 : vector<8x48xf32>
    %95 = math.exp %94 : vector<8x48xf32>
    %cst_34 = arith.constant 1.000000e+00 : f32
    %96 = vector.broadcast %cst_34 : f32 to vector<8x48xf32>
    %97 = arith.addf %96, %95 : vector<8x48xf32>
    %98 = arith.divf %96, %97 : vector<8x48xf32>
    %99 = vector.extract_strided_slice %92 {offsets = [0, 48], sizes = [8, 16], strides = [1, 1]} : vector<8x64xf32> to vector<8x16xf32>
    %100 = math.tanh %99 : vector<8x16xf32>
    %101 = vector.extract_strided_slice %98 {offsets = [0, 16], sizes = [8, 16], strides = [1, 1]} : vector<8x48xf32> to vector<8x16xf32>
    %102 = arith.mulf %101, %85 : vector<8x16xf32>
    %103 = vector.extract_strided_slice %98 {offsets = [0, 0], sizes = [8, 16], strides = [1, 1]} : vector<8x48xf32> to vector<8x16xf32>
    %104 = arith.mulf %103, %100 : vector<8x16xf32>
    %105 = arith.addf %102, %104 : vector<8x16xf32>
    %106 = vector.extract_strided_slice %98 {offsets = [0, 32], sizes = [8, 16], strides = [1, 1]} : vector<8x48xf32> to vector<8x16xf32>
    %107 = math.tanh %105 : vector<8x16xf32>
    %108 = arith.mulf %106, %107 : vector<8x16xf32>
    %c32_35 = arith.constant 32 : index
    %c0_36 = arith.constant 0 : index
    %109 = vector.load %arg9[%c32_35, %c0_36] : memref<64x16xf32, #tpu.memory_space<vmem>>, vector<8x16xf32>
    tpu.vector_store %arg9[%c32_35, %c0_36], %108 {strides = array<i32>} : memref<64x16xf32, #tpu.memory_space<vmem>>, vector<8x16xf32>,
    %c40 = arith.constant 40 : index
    %c0_37 = arith.constant 0 : index
    %110 = vector.load %arg8[%c40, %c0_37] : memref<64x64xf32, #tpu.memory_space<vmem>>, vector<8x64xf32>
    %cst_38 = arith.constant dense<0.000000e+00> : vector<8x64xf32>
    %111 = tpu.matmul %108, %0, %cst_38 {dimension_numbers = #tpu.dot_dimension_numbers<[1], [0], [0], [1], [0, 0, 1, 1], [], []>} : vector<8x16xf32>, vector<16x64xf32>, vector<8x64xf32> -> vector<8x64xf32>
    %112 = arith.addf %110, %111 : vector<8x64xf32>
    %113 = vector.extract_strided_slice %112 {offsets = [0, 0], sizes = [8, 48], strides = [1, 1]} : vector<8x64xf32> to vector<8x48xf32>
    %114 = arith.negf %113 : vector<8x48xf32>
    %115 = math.exp %114 : vector<8x48xf32>
    %cst_39 = arith.constant 1.000000e+00 : f32
    %116 = vector.broadcast %cst_39 : f32 to vector<8x48xf32>
    %117 = arith.addf %116, %115 : vector<8x48xf32>
    %118 = arith.divf %116, %117 : vector<8x48xf32>
    %119 = vector.extract_strided_slice %112 {offsets = [0, 48], sizes = [8, 16], strides = [1, 1]} : vector<8x64xf32> to vector<8x16xf32>
    %120 = math.tanh %119 : vector<8x16xf32>
    %121 = vector.extract_strided_slice %118 {offsets = [0, 16], sizes = [8, 16], strides = [1, 1]} : vector<8x48xf32> to vector<8x16xf32>
    %122 = arith.mulf %121, %105 : vector<8x16xf32>
    %123 = vector.extract_strided_slice %118 {offsets = [0, 0], sizes = [8, 16], strides = [1, 1]} : vector<8x48xf32> to vector<8x16xf32>
    %124 = arith.mulf %123, %120 : vector<8x16xf32>
    %125 = arith.addf %122, %124 : vector<8x16xf32>
    %126 = vector.extract_strided_slice %118 {offsets = [0, 32], sizes = [8, 16], strides = [1, 1]} : vector<8x48xf32> to vector<8x16xf32>
    %127 = math.tanh %125 : vector<8x16xf32>
    %128 = arith.mulf %126, %127 : vector<8x16xf32>
    %c40_40 = arith.constant 40 : index
    %c0_41 = arith.constant 0 : index
    %129 = vector.load %arg9[%c40_40, %c0_41] : memref<64x16xf32, #tpu.memory_space<vmem>>, vector<8x16xf32>
    tpu.vector_store %arg9[%c40_40, %c0_41], %128 {strides = array<i32>} : memref<64x16xf32, #tpu.memory_space<vmem>>, vector<8x16xf32>,
    %c48 = arith.constant 48 : index
    %c0_42 = arith.constant 0 : index
    %130 = vector.load %arg8[%c48, %c0_42] : memref<64x64xf32, #tpu.memory_space<vmem>>, vector<8x64xf32>
    %cst_43 = arith.constant dense<0.000000e+00> : vector<8x64xf32>
    %131 = tpu.matmul %128, %0, %cst_43 {dimension_numbers = #tpu.dot_dimension_numbers<[1], [0], [0], [1], [0, 0, 1, 1], [], []>} : vector<8x16xf32>, vector<16x64xf32>, vector<8x64xf32> -> vector<8x64xf32>
    %132 = arith.addf %130, %131 : vector<8x64xf32>
    %133 = vector.extract_strided_slice %132 {offsets = [0, 0], sizes = [8, 48], strides = [1, 1]} : vector<8x64xf32> to vector<8x48xf32>
    %134 = arith.negf %133 : vector<8x48xf32>
    %135 = math.exp %134 : vector<8x48xf32>
    %cst_44 = arith.constant 1.000000e+00 : f32
    %136 = vector.broadcast %cst_44 : f32 to vector<8x48xf32>
    %137 = arith.addf %136, %135 : vector<8x48xf32>
    %138 = arith.divf %136, %137 : vector<8x48xf32>
    %139 = vector.extract_strided_slice %132 {offsets = [0, 48], sizes = [8, 16], strides = [1, 1]} : vector<8x64xf32> to vector<8x16xf32>
    %140 = math.tanh %139 : vector<8x16xf32>
    %141 = vector.extract_strided_slice %138 {offsets = [0, 16], sizes = [8, 16], strides = [1, 1]} : vector<8x48xf32> to vector<8x16xf32>
    %142 = arith.mulf %141, %125 : vector<8x16xf32>
    %143 = vector.extract_strided_slice %138 {offsets = [0, 0], sizes = [8, 16], strides = [1, 1]} : vector<8x48xf32> to vector<8x16xf32>
    %144 = arith.mulf %143, %140 : vector<8x16xf32>
    %145 = arith.addf %142, %144 : vector<8x16xf32>
    %146 = vector.extract_strided_slice %138 {offsets = [0, 32], sizes = [8, 16], strides = [1, 1]} : vector<8x48xf32> to vector<8x16xf32>
    %147 = math.tanh %145 : vector<8x16xf32>
    %148 = arith.mulf %146, %147 : vector<8x16xf32>
    %c48_45 = arith.constant 48 : index
    %c0_46 = arith.constant 0 : index
    %149 = vector.load %arg9[%c48_45, %c0_46] : memref<64x16xf32, #tpu.memory_space<vmem>>, vector<8x16xf32>
    tpu.vector_store %arg9[%c48_45, %c0_46], %148 {strides = array<i32>} : memref<64x16xf32, #tpu.memory_space<vmem>>, vector<8x16xf32>,
    %c56 = arith.constant 56 : index
    %c0_47 = arith.constant 0 : index
    %150 = vector.load %arg8[%c56, %c0_47] : memref<64x64xf32, #tpu.memory_space<vmem>>, vector<8x64xf32>
    %cst_48 = arith.constant dense<0.000000e+00> : vector<8x64xf32>
    %151 = tpu.matmul %148, %0, %cst_48 {dimension_numbers = #tpu.dot_dimension_numbers<[1], [0], [0], [1], [0, 0, 1, 1], [], []>} : vector<8x16xf32>, vector<16x64xf32>, vector<8x64xf32> -> vector<8x64xf32>
    %152 = arith.addf %150, %151 : vector<8x64xf32>
    %153 = vector.extract_strided_slice %152 {offsets = [0, 0], sizes = [8, 48], strides = [1, 1]} : vector<8x64xf32> to vector<8x48xf32>
    %154 = arith.negf %153 : vector<8x48xf32>
    %155 = math.exp %154 : vector<8x48xf32>
    %cst_49 = arith.constant 1.000000e+00 : f32
    %156 = vector.broadcast %cst_49 : f32 to vector<8x48xf32>
    %157 = arith.addf %156, %155 : vector<8x48xf32>
    %158 = arith.divf %156, %157 : vector<8x48xf32>
    %159 = vector.extract_strided_slice %152 {offsets = [0, 48], sizes = [8, 16], strides = [1, 1]} : vector<8x64xf32> to vector<8x16xf32>
    %160 = math.tanh %159 : vector<8x16xf32>
    %161 = vector.extract_strided_slice %158 {offsets = [0, 16], sizes = [8, 16], strides = [1, 1]} : vector<8x48xf32> to vector<8x16xf32>
    %162 = arith.mulf %161, %145 : vector<8x16xf32>
    %163 = vector.extract_strided_slice %158 {offsets = [0, 0], sizes = [8, 16], strides = [1, 1]} : vector<8x48xf32> to vector<8x16xf32>
    %164 = arith.mulf %163, %160 : vector<8x16xf32>
    %165 = arith.addf %162, %164 : vector<8x16xf32>
    %166 = vector.extract_strided_slice %158 {offsets = [0, 32], sizes = [8, 16], strides = [1, 1]} : vector<8x48xf32> to vector<8x16xf32>
    %167 = math.tanh %165 : vector<8x16xf32>
    %168 = arith.mulf %166, %167 : vector<8x16xf32>
    %c56_50 = arith.constant 56 : index
    %c0_51 = arith.constant 0 : index
    %169 = vector.load %arg9[%c56_50, %c0_51] : memref<64x16xf32, #tpu.memory_space<vmem>>, vector<8x16xf32>
    tpu.vector_store %arg9[%c56_50, %c0_51], %168 {strides = array<i32>} : memref<64x16xf32, #tpu.memory_space<vmem>>, vector<8x16xf32>,
    %c0_52 = arith.constant 0 : index
    %c0_53 = arith.constant 0 : index
    %170 = vector.load %arg9[%c0_52, %c0_53] : memref<64x16xf32, #tpu.memory_space<vmem>>, vector<64x16xf32>
    %c0_54 = arith.constant 0 : index
    %c0_55 = arith.constant 0 : index
    %171 = vector.load %arg5[%c0_54, %c0_55] : memref<16x128xf32, #tpu.memory_space<vmem>>, vector<16x128xf32>
    %cst_56 = arith.constant dense<0.000000e+00> : vector<64x128xf32>
    %172 = tpu.matmul %170, %171, %cst_56 {dimension_numbers = #tpu.dot_dimension_numbers<[1], [0], [0], [1], [0, 0, 1, 1], [], []>} : vector<64x16xf32>, vector<16x128xf32>, vector<64x128xf32> -> vector<64x128xf32>
    %c0_57 = arith.constant 0 : index
    %c0_58 = arith.constant 0 : index
    %173 = vector.load %arg6[%c0_57, %c0_58] : memref<1x128xf32, #tpu.memory_space<vmem>>, vector<1x128xf32>
    %174 = vector.broadcast %173 : vector<1x128xf32> to vector<64x128xf32>
    %175 = arith.addf %172, %174 : vector<64x128xf32>
    %c0_59 = arith.constant 0 : index
    %c0_60 = arith.constant 0 : index
    %176 = vector.load %arg7[%c0_59, %c0_60] : memref<64x128xf32, #tpu.memory_space<vmem>>, vector<64x128xf32>
    tpu.vector_store %arg7[%c0_59, %c0_60], %175 {strides = array<i32>} : memref<64x128xf32, #tpu.memory_space<vmem>>, vector<64x128xf32>,
    return
  }
  func.func @transform_0(%arg0: i32) -> (i32, i32) {
    %c0_i32 = arith.constant 0 : i32
    %c0_i32_0 = arith.constant 0 : i32
    %c0_i32_1 = arith.constant 0 : i32
    return %c0_i32, %c0_i32_0 : i32, i32
  }
  func.func @transform_1(%arg0: i32) -> (i32, i32) {
    %c0_i32 = arith.constant 0 : i32
    %c0_i32_0 = arith.constant 0 : i32
    %c0_i32_1 = arith.constant 0 : i32
    return %c0_i32, %c0_i32_0 : i32, i32
  }
  func.func @transform_2(%arg0: i32) -> (i32, i32) {
    %c0_i32 = arith.constant 0 : i32
    %c0_i32_0 = arith.constant 0 : i32
    %c0_i32_1 = arith.constant 0 : i32
    return %c0_i32, %c0_i32_0 : i32, i32
  }
  func.func @transform_3(%arg0: i32) -> (i32, i32) {
    %c0_i32 = arith.constant 0 : i32
    %c0_i32_0 = arith.constant 0 : i32
    %c0_i32_1 = arith.constant 0 : i32
    return %c0_i32, %c0_i32_0 : i32, i32
  }
  func.func @transform_4(%arg0: i32) -> (i32, i32) {
    %c0_i32 = arith.constant 0 : i32
    %c0_i32_0 = arith.constant 0 : i32
    %c0_i32_1 = arith.constant 0 : i32
    return %c0_i32, %c0_i32_0 : i32, i32
  }
  func.func @transform_5(%arg0: i32) -> (i32, i32) {
    %c0_i32 = arith.constant 0 : i32
    %c0_i32_0 = arith.constant 0 : i32
    %c0_i32_1 = arith.constant 0 : i32
    return %c0_i32, %c0_i32_0 : i32, i32
  }
  func.func @transform_6(%arg0: i32) -> (i32, i32) {
    %c0_i32 = arith.constant 0 : i32
    %c0_i32_0 = arith.constant 0 : i32
    %c0_i32_1 = arith.constant 0 : i32
    return %c0_i32, %c0_i32_0 : i32, i32
  }
}

</mosaic_0001>

<bundles_post_ra>
// kernel: tpu_custom_call.1
= control target key start
LH: loop header
LB: loop body
LE: loop exit
PB: predicated region body
PF: predicated region fallthrough
CT: control target
= control target key end

     0   :  { %vm45_vm0 = vcmask 261120   ;;  %v1484_v6 = vmov 0.0|0.0   ;;  %vm1485_vm1 = vmmov 0   ;;  %v1486_v10 = vmov 0.0   ;;  %s1710_s0 = inlined_call_operand.vmem [shape: f32[64,32], index: 0, kind: input, shape index: {}]   ;;  %s1711_s1 = inlined_call_operand.vmem [shape: f32[32,64], index: 1, kind: input, shape index: {}]   ;;  %s1712_s2 = inlined_call_operand.vmem [shape: f32[16,64], index: 2, kind: input, shape index: {}]   ;;  %s1713_s3 = inlined_call_operand.vmem [shape: f32[1,64], index: 3, kind: input, shape index: {}]   ;;  %s1714_s4 = inlined_call_operand.vmem [shape: f32[16,128], index: 4, kind: input, shape index: {}]   ;;  %s1715_s5 = inlined_call_operand.vmem [shape: f32[1,128], index: 5, kind: input, shape index: {}]   ;;  %s1716_s6 = inlined_call_operand.hbm [shape: f32[64,128], index: 6, kind: output, shape index: {}]  }
   0x1   :  { %v34_v0 = vld [vmem:[%s1711_s1] sm:$0xff]  ;;  %v35_v1 = vld [vmem:[%s1711_s1 + $0x8] sm:$0xff]  ;;  %v36_v2 = vld [vmem:[%s1711_s1 + $0x10] sm:$0xff]  ;;  %1362 = vmatprep.subr.bf16.mxu1 %v1484_v6  ;;  %1290 = vmatprep.mubr.msk.f32.mxu1 %vm1485_vm1, %v1486_v10 }
   0x2   :  { %v1351_v3 = vpack.c.bf16 %v35_v1, %v34_v0  ;;  %v37_v4 = vld [vmem:[%s1711_s1 + $0x18] sm:$0xff]  ;;  %v26_v5 = vld [vmem:[%s1710_s0] sm:$0xff]  ;;  %v25_v9 = vld [vmem:[%s1712_s2 + $0x8] sm:$0xff] }
   0x3   :  { %v1355_v7 = vpack.c.bf16 %v37_v4, %v36_v2  ;;  %1267 = vmatprep.mubr.msk.f32.mxu0 %vm45_vm0, %v26_v5  ;;  %v24_v8 = vld [vmem:[%s1712_s2] sm:$0xff] }
   0x4   :  { %1352 = vmatprep.subr.bf16.mxu0 %v1351_v3  ;;  %v1553_v11 = vpack.c.bf16 %v25_v9, %v24_v8 }
   0x5   :  { %1354 = vmatpush3.bf16.msra.mxu0 %v1351_v3 }
   0x6   :  { %11 = vsyncpa [#allocation5], 0  ;;  %1356 = vmatprep.subr.bf16.mxu0 %v1355_v7  ;;  %1364 = vmatpush3.bf16.msra.mxu1 %v1553_v11  ;;  %v27_v12 = vld [vmem:[%s1710_s0 + $0x8] sm:$0xff]  ;;  %v28_v13 = vld [vmem:[%s1710_s0 + $0x10] sm:$0xff]  ;;  %vm175_vm2 = vcmask 523264   ;;  %s1489_s25 = smov 96  }
   0x7   :  { %1365 = vmatprep.subr.bf16.mxu1 %v1484_v6  ;;  %v29_v14 = vld [vmem:[%s1710_s0 + $0x18] sm:$0xff]  ;;  %v30_v15 = vld [vmem:[%s1710_s0 + $0x20] sm:$0xff]  ;;  %v31_v16 = vld [vmem:[%s1710_s0 + $0x28] sm:$0xff]  ;;  %vm185_vm3 = vcmask 130048  }
   0x8   :  { %v32_v17 = vld [vmem:[%s1710_s0 + $0x30] sm:$0xff]  ;;  %v33_v18 = vld [vmem:[%s1710_s0 + $0x38] sm:$0xff]  ;;  %v1180_v19 = vld [vmem:[%s1713_s3] ss:$0 sm:$0xff]  ;;  %s1487_s0 = smov 80   ;;  %s1488_s3 = smov 16  }
   0x9   :  { %1358 = vmatpush3.bf16.msra.mxu0 %v1355_v7 }
   0xa   :  { %1359 = vmatprep.subr.bf16.mxu0 %v1484_v6 }
   0xc   :  { %1268 = vmatmul.mubr.msk.f32.vlgmr.msra.gmra.mrb[0].mxu0 %vm45_vm0, %v27_v12 }
   0xd   :  { %1361 = vmatpush3.bf16.msra.mxu0 %v1553_v11  ;;  %1270 = vmatprep.mubr.msk.f32.mxu0 %vm45_vm0, %v28_v13 }
   0xe   :  { %1374 = vmatprep.subr.bf16.mxu0 %v1484_v6 }
  0x10   :  { %1271 = vmatmul.mubr.msk.f32.gmra.mrb[2].mxu0 %vm45_vm0, %v29_v14 }
  0x11   :  { %1273 = vmatprep.mubr.msk.f32.mxu0 %vm45_vm0, %v30_v15 }
  0x14   :  { %1274 = vmatmul.mubr.msk.f32.gmra.mrb[4].mxu0 %vm45_vm0, %v31_v16 }
  0x15   :  { %1276 = vmatprep.mubr.msk.f32.mxu0 %vm45_vm0, %v32_v17 }
  0x18   :  { %1277 = vmatmul.mubr.msk.f32.gmra.mrb[6].mxu0 %vm45_vm0, %v33_v18 }
  0x19   :  { %1283 = vmatprep.mubr.msk.f32.mxu0 %vm1485_vm1, %v1486_v10 }
  0x1c   :  { %1284 = vmatmul.mubr.f32.vlgmr.msra.gmra.mrb[8].mxu0 %v1486_v10 }
  0x1d   :  { %1376 = vmatpush3.bf16.msra.mxu0 %v1553_v11  ;;  %1318 = vmatprep.mubr.msk.f32.mxu0 %vm1485_vm1, %v1486_v10 }
  0x1e   :  { %1380 = vmatprep.subr.bf16.mxu0 %v1484_v6 }
  0xdf   :  { %v1269_v20 = vpop.f32.mrb[0].mxu0 }
  0xe0   :  { %v142_v21 = vadd.f32 %v1269_v20, %v1180_v19  ;;  %v136_v22 = vpop.f32.mrb[1].mxu0 }
  0xe1   :  { %v137_v23 = vadd.f32 %v1180_v19, %v136_v22 }
  0xe2   :  { %177 = vst.msk [vmem:[#allocation2 + $0x8] sm:$0xff] %vm175_vm2, %v142_v21 }
  0xe3   :  { %176 = vst.msk [vmem:[#allocation2] sm:$0xff] %vm175_vm2, %v137_v23  ;;  %v1272_v24 = vpop.f32.mrb[2].mxu0 }
  0xe4   :  { %v152_v25 = vadd.f32 %v1272_v24, %v1180_v19  ;;  %v146_v26 = vpop.f32.mrb[3].mxu0 }
  0xe5   :  { %v147_v27 = vadd.f32 %v1180_v19, %v146_v26 }
  0xe6   :  { %179 = vst.msk [vmem:[#allocation2 + $0x18] sm:$0xff] %vm175_vm2, %v152_v25 }
  0xe7   :  { %178 = vst.msk [vmem:[#allocation2 + $0x10] sm:$0xff] %vm175_vm2, %v147_v27  ;;  %v1275_v28 = vpop.f32.mrb[4].mxu0 }
  0xe8   :  { %v162_v29 = vadd.f32 %v1275_v28, %v1180_v19  ;;  %v156_v30 = vpop.f32.mrb[5].mxu0 }
  0xe9   :  { %v157_v31 = vadd.f32 %v1180_v19, %v156_v30  ;;  %v289_v54 = vld [vmem:[#allocation2 + $0x8] sm:$0xff] }
  0xea   :  { %181 = vst.msk [vmem:[#allocation2 + $0x28] sm:$0xff] %vm175_vm2, %v162_v29  ;;  %v184_v36 = vld [vmem:[#allocation2] sm:$0xff] }
  0xeb   :  { %180 = vst.msk [vmem:[#allocation2 + $0x20] sm:$0xff] %vm175_vm2, %v157_v31  ;;  %v1278_v32 = vpop.f32.mrb[6].mxu0 }
  0xec   :  { %v172_v33 = vadd.f32 %v1278_v32, %v1180_v19  ;;  %v166_v34 = vpop.f32.mrb[7].mxu0 }
  0xed   :  { %v167_v35 = vadd.f32 %v1180_v19, %v166_v34  ;;  %v495_v29 = vld [vmem:[#allocation2 + $0x18] sm:$0xff] }
  0xee   :  { %183 = vst.msk [vmem:[#allocation2 + $0x38] sm:$0xff] %vm175_vm2, %v172_v33  ;;  %v392_v9 = vld [vmem:[#allocation2 + $0x10] sm:$0xff] }
  0xef   :  { %182 = vst.msk [vmem:[#allocation2 + $0x30] sm:$0xff] %vm175_vm2, %v167_v35  ;;  %v255_v37 = vpop.f32.mrb[8].mxu0 }
  0xf0   :  { %v259_v38 = vadd.f32 %v255_v37, %v184_v36  ;;  %v1285_v39 = vpop.f32.mrb[9].mxu0 }
  0xf2   :  { %1396 = vtanh.f32 %v259_v38  ;;  %v1189_v41 = vmul.f32 -1.442695, %v259_v38 }
  0xf4   :  { %1398 = vpow2.f32 %v1189_v41 }
  0xfc   :  { %v1397_v40 = vpop.eup %1396 }
  0xfd   :  { %269 = vrot.lane.b32.xlu0 %v1397_v40, %s1487_s0 }
  0xfe   :  { %v1399_v42 = vpop.eup %1398 }
  0xff   :  { %v263_v43 = vadd.f32 1.0, %v1399_v42 }
 0x101   :  { %1400 = vrcp.f32 %v263_v43 }
 0x10b   :  { %v1401_v44 = vpop.eup %1400 }
 0x10c   :  { %v267_v47 = vmul.f32 0.0, %v1401_v44 }
 0x16f   :  { %v270_v45 = vpop.permute.xlu0 %269 }
 0x170   :  { %v272_v46 = vmul.f32 %v1401_v44, %v270_v45 }
 0x172   :  { %274 = vrot.lane.b32.xlu0 %v272_v46, %s1488_s3  ;;  %v598_v46 = vld [vmem:[#allocation2 + $0x20] sm:$0xff] }
 0x1e4   :  { %v275_v48 = vpop.permute.xlu0 %274 }
 0x1e5   :  { %v277_v49 = vadd.f32 %v275_v48, %v267_v47 }
 0x1e7   :  { %1402 = vtanh.f32 %v277_v49 }
 0x1f1   :  { %v1403_v50 = vpop.eup %1402 }
 0x1f2   :  { %280 = vrot.lane.b32.xlu1 %v1403_v50, %s1488_s3 }
 0x264   :  { %v281_v51 = vpop.permute.xlu1 %280 }
 0x265   :  { %v283_v52 = vmul.f32 %v1401_v44, %v281_v51 }
 0x267   :  { %285 = vrot.lane.b32.xlu1 %v283_v52, %s1489_s25 }
 0x2d9   :  { %v286_v53 = vpop.permute.xlu1 %285 }
 0x2da   :  { %288 = vst.msk [vmem:[#allocation3] sm:$0xff] %vm185_vm3, %v286_v53  ;;  %1291 = vmatmul.mubr.msk.f32.vlgmr.msra.gmra.mrb[0].mxu1 %vm185_vm3, %v286_v53 }
 0x2db   :  { %1367 = vmatpush3.bf16.msra.mxu1 %v1553_v11  ;;  %1297 = vmatprep.mubr.msk.f32.mxu1 %vm1485_vm1, %v1486_v10 }
 0x2dc   :  { %1368 = vmatprep.subr.bf16.mxu1 %v1484_v6 }
 0x3ad   :  { %v358_v55 = vpop.f32.mrb[0].mxu1 }
 0x3ae   :  { %v362_v56 = vadd.f32 %v358_v55, %v289_v54  ;;  %v1292_v57 = vpop.f32.mrb[1].mxu1 }
 0x3b0   :  { %1404 = vtanh.f32 %v362_v56  ;;  %v1191_v59 = vmul.f32 -1.442695, %v362_v56 }
 0x3b2   :  { %1406 = vpow2.f32 %v1191_v59 }
 0x3ba   :  { %v1405_v58 = vpop.eup %1404 }
 0x3bb   :  { %372 = vrot.lane.b32.xlu0 %v1405_v58, %s1487_s0 }
 0x3bc   :  { %v1407_v60 = vpop.eup %1406 }
 0x3bd   :  { %v366_v61 = vadd.f32 1.0, %v1407_v60 }
 0x3bf   :  { %1408 = vrcp.f32 %v366_v61 }
 0x3c9   :  { %v1409_v62 = vpop.eup %1408 }
 0x3ca   :  { %v370_v1 = vmul.f32 %v1409_v62, %v277_v49 }
 0x42d   :  { %v373_v63 = vpop.permute.xlu0 %372 }
 0x42e   :  { %v375_v0 = vmul.f32 %v1409_v62, %v373_v63 }
 0x430   :  { %377 = vrot.lane.b32.xlu1 %v375_v0, %s1488_s3  ;;  %v701_v0 = vld [vmem:[#allocation2 + $0x28] sm:$0xff] }
 0x4a2   :  { %v378_v2 = vpop.permute.xlu1 %377 }
 0x4a3   :  { %v380_v3 = vadd.f32 %v378_v2, %v370_v1 }
 0x4a5   :  { %1410 = vtanh.f32 %v380_v3 }
 0x4af   :  { %v1411_v4 = vpop.eup %1410 }
 0x4b0   :  { %383 = vrot.lane.b32.xlu0 %v1411_v4, %s1488_s3 }
 0x522   :  { %v384_v5 = vpop.permute.xlu0 %383 }
 0x523   :  { %v386_v7 = vmul.f32 %v1409_v62, %v384_v5 }
 0x525   :  { %388 = vrot.lane.b32.xlu1 %v386_v7, %s1489_s25 }
 0x597   :  { %v389_v8 = vpop.permute.xlu1 %388 }
 0x598   :  { %391 = vst.msk [vmem:[#allocation3 + $0x8] sm:$0xff] %vm185_vm3, %v389_v8  ;;  %1298 = vmatmul.mubr.msk.f32.vlgmr.msra.gmra.mrb[2].mxu1 %vm185_vm3, %v389_v8 }
 0x599   :  { %1370 = vmatpush3.bf16.msra.mxu1 %v1553_v11  ;;  %1304 = vmatprep.mubr.msk.f32.mxu1 %vm1485_vm1, %v1486_v10 }
 0x59a   :  { %1371 = vmatprep.subr.bf16.mxu1 %v1484_v6 }
 0x66b   :  { %v461_v12 = vpop.f32.mrb[2].mxu1 }
 0x66c   :  { %v465_v13 = vadd.f32 %v461_v12, %v392_v9  ;;  %v1299_v14 = vpop.f32.mrb[3].mxu1 }
 0x66e   :  { %1412 = vtanh.f32 %v465_v13  ;;  %v1193_v16 = vmul.f32 -1.442695, %v465_v13 }
 0x670   :  { %1414 = vpow2.f32 %v1193_v16  ;;  %v1018_v16 = vld [vmem:[%s1714_s4] sm:$0xff] }
 0x678   :  { %v1413_v15 = vpop.eup %1412 }
 0x679   :  { %475 = vrot.lane.b32.xlu0 %v1413_v15, %s1487_s0 }
 0x67a   :  { %v1415_v17 = vpop.eup %1414 }
 0x67b   :  { %v469_v18 = vadd.f32 1.0, %v1415_v17  ;;  %v1019_v17 = vld [vmem:[%s1714_s4 + $0x8] sm:$0xff] }
 0x67d   :  { %1416 = vrcp.f32 %v469_v18  ;;  %v1383_v18 = vpack.c.bf16 %v1019_v17, %v1018_v16 }
 0x687   :  { %v1417_v19 = vpop.eup %1416 }
 0x688   :  { %v473_v22 = vmul.f32 %v1417_v19, %v380_v3 }
 0x6eb   :  { %v476_v20 = vpop.permute.xlu0 %475 }
 0x6ec   :  { %v478_v21 = vmul.f32 %v1417_v19, %v476_v20 }
 0x6ee   :  { %480 = vrot.lane.b32.xlu1 %v478_v21, %s1488_s3 }
 0x760   :  { %v481_v23 = vpop.permute.xlu1 %480 }
 0x761   :  { %v483_v24 = vadd.f32 %v481_v23, %v473_v22  ;;  %v1010_v22 = vld [vmem:[#allocation3] sm:$0xff]  ;;  %v1011_v23 = vld [vmem:[#allocation3 + $0x8] sm:$0xff] }
 0x763   :  { %1418 = vtanh.f32 %v483_v24 }
 0x76d   :  { %v1419_v25 = vpop.eup %1418 }
 0x76e   :  { %486 = vrot.lane.b32.xlu0 %v1419_v25, %s1488_s3 }
 0x7e0   :  { %v487_v26 = vpop.permute.xlu0 %486 }
 0x7e1   :  { %v489_v27 = vmul.f32 %v1417_v19, %v487_v26 }
 0x7e3   :  { %491 = vrot.lane.b32.xlu1 %v489_v27, %s1489_s25 }
 0x855   :  { %v492_v28 = vpop.permute.xlu1 %491 }
 0x856   :  { %494 = vst.msk [vmem:[#allocation3 + $0x10] sm:$0xff] %vm185_vm3, %v492_v28  ;;  %1305 = vmatmul.mubr.msk.f32.vlgmr.msra.gmra.mrb[4].mxu1 %vm185_vm3, %v492_v28  ;;  %v804_v28 = vld [vmem:[#allocation2 + $0x30] sm:$0xff] }
 0x857   :  { %1373 = vmatpush3.bf16.msra.mxu1 %v1553_v11  ;;  %1311 = vmatprep.mubr.msk.f32.mxu1 %vm1485_vm1, %v1486_v10 }
 0x858   :  { %1377 = vmatprep.subr.bf16.mxu1 %v1484_v6 }
 0x929   :  { %v564_v30 = vpop.f32.mrb[4].mxu1 }
 0x92a   :  { %v568_v31 = vadd.f32 %v564_v30, %v495_v29  ;;  %v1306_v32 = vpop.f32.mrb[5].mxu1 }
 0x92b   :  { %v1675_v32 = vld [vmem:[%s1715_s5] ss:$0 sm:$0xff]  ;;  %s1490_s5 = smov [#allocation4]  }
 0x92c   :  { %1420 = vtanh.f32 %v568_v31  ;;  %v1195_v34 = vmul.f32 -1.442695, %v568_v31  ;;  %s1169_s7 = sshll.u32 %s1490_s5, 4  ;;  %s1170_s7 = int_to_ptr.vmem [resolvable:$true] %s1169_s7 }
 0x92d   :  { %s1460_s8 = scalar_lea.vmem %s1170_s7, 1024  ;;  %p1465_p1 = scmp.lt.s32.totalorder %s1170_s7, %s1170_s7 }
 0x92e   :  { %1422 = vpow2.f32 %v1195_v34  ;;  %p1461_p0 = scmp.ne.s32.totalorder %s1170_s7, %s1460_s8  ;;  %p1466_p2 = scmp.lt.s32.totalorder %s1460_s8, %s1460_s8 }
 0x930   :  { %p1467_p3 = por %p1466_p2, %p1465_p1 }
 0x932   :  { %p1468_p4 = pnand %p1467_p3, %p1461_p0 }
 0x936   :  { %v1421_v33 = vpop.eup %1420 }
 0x937   :  { %578 = vrot.lane.b32.xlu0 %v1421_v33, %s1487_s0 }
 0x938   :  { %v1423_v35 = vpop.eup %1422 }
 0x939   :  { %v572_v36 = vadd.f32 1.0, %v1423_v35 }
 0x93b   :  { %1424 = vrcp.f32 %v572_v36 }
 0x945   :  { %v1425_v37 = vpop.eup %1424 }
 0x946   :  { %v576_v40 = vmul.f32 %v1425_v37, %v483_v24  ;;  %v1012_v24 = vld [vmem:[#allocation3 + $0x10] sm:$0xff] }
 0x9a9   :  { %v579_v38 = vpop.permute.xlu0 %578 }
 0x9aa   :  { %v581_v39 = vmul.f32 %v1425_v37, %v579_v38 }
 0x9ac   :  { %583 = vrot.lane.b32.xlu1 %v581_v39, %s1488_s3 }
 0xa1e   :  { %v584_v6 = vpop.permute.xlu1 %583 }
 0xa1f   :  { %v586_v41 = vadd.f32 %v584_v6, %v576_v40 }
 0xa21   :  { %1426 = vtanh.f32 %v586_v41 }
 0xa2b   :  { %v1427_v42 = vpop.eup %1426 }
 0xa2c   :  { %589 = vrot.lane.b32.xlu0 %v1427_v42, %s1488_s3 }
 0xa9e   :  { %v590_v43 = vpop.permute.xlu0 %589 }
 0xa9f   :  { %v592_v44 = vmul.f32 %v1425_v37, %v590_v43 }
 0xaa1   :  { %594 = vrot.lane.b32.xlu1 %v592_v44, %s1489_s25 }
 0xb13   :  { %v595_v45 = vpop.permute.xlu1 %594 }
 0xb14   :  { %597 = vst.msk [vmem:[#allocation3 + $0x18] sm:$0xff] %vm185_vm3, %v595_v45  ;;  %1312 = vmatmul.mubr.msk.f32.vlgmr.msra.gmra.mrb[6].mxu1 %vm185_vm3, %v595_v45 }
 0xb15   :  { %1379 = vmatpush3.bf16.msra.mxu1 %v1553_v11  ;;  %1325 = vmatprep.mubr.msk.f32.mxu1 %vm1485_vm1, %v1486_v10 }
 0xb16   :  { %1384 = vmatprep.subr.bf16.mxu1 %v1383_v18 }
 0xb1b   :  { %v1013_v25 = vld [vmem:[#allocation3 + $0x18] sm:$0xff] }
 0xbe7   :  { %v667_v47 = vpop.f32.mrb[6].mxu1 }
 0xbe8   :  { %v671_v48 = vadd.f32 %v667_v47, %v598_v46  ;;  %v1313_v49 = vpop.f32.mrb[7].mxu1 }
 0xbea   :  { %1428 = vtanh.f32 %v671_v48  ;;  %v1197_v51 = vmul.f32 -1.442695, %v671_v48 }
 0xbec   :  { %1430 = vpow2.f32 %v1197_v51 }
 0xbf4   :  { %v1429_v50 = vpop.eup %1428 }
 0xbf5   :  { %681 = vrot.lane.b32.xlu0 %v1429_v50, %s1487_s0 }
 0xbf6   :  { %v1431_v52 = vpop.eup %1430 }
 0xbf7   :  { %v675_v53 = vadd.f32 1.0, %v1431_v52 }
 0xbf9   :  { %1432 = vrcp.f32 %v675_v53 }
 0xc03   :  { %v1433_v54 = vpop.eup %1432 }
 0xc04   :  { %v679_v57 = vmul.f32 %v1433_v54, %v586_v41 }
 0xc67   :  { %v682_v55 = vpop.permute.xlu0 %681 }
 0xc68   :  { %v684_v56 = vmul.f32 %v1433_v54, %v682_v55 }
 0xc6a   :  { %686 = vrot.lane.b32.xlu1 %v684_v56, %s1488_s3 }
 0xcdc   :  { %v687_v58 = vpop.permute.xlu1 %686 }
 0xcdd   :  { %v689_v59 = vadd.f32 %v687_v58, %v679_v57 }
 0xcdf   :  { %1434 = vtanh.f32 %v689_v59 }
 0xce9   :  { %v1435_v60 = vpop.eup %1434 }
 0xcea   :  { %692 = vrot.lane.b32.xlu0 %v1435_v60, %s1488_s3 }
 0xd5c   :  { %v693_v61 = vpop.permute.xlu0 %692 }
 0xd5d   :  { %v695_v62 = vmul.f32 %v1433_v54, %v693_v61 }
 0xd5f   :  { %697 = vrot.lane.b32.xlu1 %v695_v62, %s1489_s25 }
 0xdd1   :  { %v698_v63 = vpop.permute.xlu1 %697 }
 0xdd2   :  { %700 = vst.msk [vmem:[#allocation3 + $0x20] sm:$0xff] %vm185_vm3, %v698_v63  ;;  %1319 = vmatmul.mubr.msk.f32.vlgmr.msra.gmra.mrb[10].mxu0 %vm185_vm3, %v698_v63 }
 0xdd3   :  { %1382 = vmatpush3.bf16.msra.mxu0 %v1553_v11  ;;  %1332 = vmatprep.mubr.msk.f32.mxu0 %vm1485_vm1, %v1486_v10 }
 0xdd9   :  { %v1014_v26 = vld [vmem:[#allocation3 + $0x20] sm:$0xff] }
 0xea5   :  { %v770_v1 = vpop.f32.mrb[10].mxu0 }
 0xea6   :  { %v774_v2 = vadd.f32 %v770_v1, %v701_v0  ;;  %v1320_v3 = vpop.f32.mrb[11].mxu0 }
 0xea8   :  { %1436 = vtanh.f32 %v774_v2  ;;  %v1199_v5 = vmul.f32 -1.442695, %v774_v2 }
 0xeaa   :  { %1438 = vpow2.f32 %v1199_v5 }
 0xeb2   :  { %v1437_v4 = vpop.eup %1436 }
 0xeb3   :  { %784 = vrot.lane.b32.xlu0 %v1437_v4, %s1487_s0 }
 0xeb4   :  { %v1439_v7 = vpop.eup %1438 }
 0xeb5   :  { %v778_v8 = vadd.f32 1.0, %v1439_v7 }
 0xeb7   :  { %1440 = vrcp.f32 %v778_v8 }
 0xec1   :  { %v1441_v9 = vpop.eup %1440 }
 0xec2   :  { %v782_v11 = vmul.f32 %v1441_v9, %v689_v59  ;;  %v907_v59 = vld [vmem:[#allocation2 + $0x38] sm:$0xff] }
 0xf25   :  { %v785_v12 = vpop.permute.xlu0 %784 }
 0xf26   :  { %v787_v13 = vmul.f32 %v1441_v9, %v785_v12 }
 0xf28   :  { %789 = vrot.lane.b32.xlu1 %v787_v13, %s1488_s3 }
 0xf9a   :  { %v790_v10 = vpop.permute.xlu1 %789 }
 0xf9b   :  { %v792_v14 = vadd.f32 %v790_v10, %v782_v11 }
 0xf9d   :  { %1442 = vtanh.f32 %v792_v14 }
 0xfa7   :  { %v1443_v15 = vpop.eup %1442 }
 0xfa8   :  { %795 = vrot.lane.b32.xlu0 %v1443_v15, %s1488_s3 }
0x101a   :  { %v796_v19 = vpop.permute.xlu0 %795 }
0x101b   :  { %v798_v20 = vmul.f32 %v1441_v9, %v796_v19 }
0x101d   :  { %800 = vrot.lane.b32.xlu1 %v798_v20, %s1489_s25 }
0x108f   :  { %v801_v21 = vpop.permute.xlu1 %800 }
0x1090   :  { %803 = vst.msk [vmem:[#allocation3 + $0x28] sm:$0xff] %vm185_vm3, %v801_v21  ;;  %1326 = vmatmul.mubr.msk.f32.vlgmr.msra.gmra.mrb[8].mxu1 %vm185_vm3, %v801_v21 }
0x1091   :  { %1386 = vmatpush3.bf16.msra.mxu1 %v1383_v18  ;;  %1339 = vmatprep.mubr.msk.f32.mxu1 %vm185_vm3, %v1010_v22 }
0x1094   :  { %1340 = vmatmul.mubr.msk.f32.vlgmr.msra.gmra.mrb[10].mxu1 %vm185_vm3, %v1011_v23 }
0x1095   :  { %1342 = vmatprep.mubr.msk.f32.mxu1 %vm185_vm3, %v1012_v24 }
0x1097   :  { %v1015_v27 = vld [vmem:[#allocation3 + $0x28] sm:$0xff] }
0x1098   :  { %1343 = vmatmul.mubr.msk.f32.gmra.mrb[12].mxu1 %vm185_vm3, %v1013_v25 }
0x1099   :  { %1345 = vmatprep.mubr.msk.f32.mxu1 %vm185_vm3, %v1014_v26 }
0x109c   :  { %1346 = vmatmul.mubr.msk.f32.gmra.mrb[14].mxu1 %vm185_vm3, %v1015_v27 }
0x1163   :  { %v873_v29 = vpop.f32.mrb[8].mxu1 }
0x1164   :  { %v877_v30 = vadd.f32 %v873_v29, %v804_v28  ;;  %v1327_v31 = vpop.f32.mrb[9].mxu1 }
0x1166   :  { %1444 = vtanh.f32 %v877_v30  ;;  %v1201_v45 = vmul.f32 -1.442695, %v877_v30 }
0x1167   :  { %v1341_v33 = vpop.f32.mrb[10].mxu1 }
0x1168   :  { %v1123_v34 = vadd.f32 %v1341_v33, %v1675_v32  ;;  %v1117_v35 = vpop.f32.mrb[11].mxu1  ;;  %1446 = vpow2.f32 %v1201_v45 }
0x1169   :  { %v1118_v36 = vadd.f32 %v1675_v32, %v1117_v35 }
0x116a   :  { %1157 = vst [vmem:[#allocation4 + $0x8] sm:$0xff] %v1123_v34 }
0x116b   :  { %1156 = vst [vmem:[#allocation4] sm:$0xff] %v1118_v36  ;;  %v1344_v37 = vpop.f32.mrb[12].mxu1 }
0x116c   :  { %v1133_v38 = vadd.f32 %v1344_v37, %v1675_v32  ;;  %v1127_v39 = vpop.f32.mrb[13].mxu1 }
0x116d   :  { %v1128_v40 = vadd.f32 %v1675_v32, %v1127_v39 }
0x116e   :  { %1159 = vst [vmem:[#allocation4 + $0x18] sm:$0xff] %v1133_v38 }
0x116f   :  { %1158 = vst [vmem:[#allocation4 + $0x10] sm:$0xff] %v1128_v40  ;;  %v1347_v6 = vpop.f32.mrb[14].mxu1 }
0x1170   :  { %v1445_v41 = vpop.eup %1444  ;;  %v1143_v42 = vadd.f32 %v1347_v6, %v1675_v32  ;;  %v1137_v43 = vpop.f32.mrb[15].mxu1 }
0x1171   :  { %v1138_v44 = vadd.f32 %v1675_v32, %v1137_v43  ;;  %887 = vrot.lane.b32.xlu0 %v1445_v41, %s1487_s0 }
0x1172   :  { %1161 = vst [vmem:[#allocation4 + $0x28] sm:$0xff] %v1143_v42  ;;  %v1447_v46 = vpop.eup %1446 }
0x1173   :  { %1160 = vst [vmem:[#allocation4 + $0x20] sm:$0xff] %v1138_v44  ;;  %v881_v47 = vadd.f32 1.0, %v1447_v46 }
0x1175   :  { %1448 = vrcp.f32 %v881_v47 }
0x117f   :  { %v1449_v48 = vpop.eup %1448 }
0x1180   :  { %v885_v51 = vmul.f32 %v1449_v48, %v792_v14 }
0x11e3   :  { %v888_v49 = vpop.permute.xlu0 %887 }
0x11e4   :  { %v890_v50 = vmul.f32 %v1449_v48, %v888_v49 }
0x11e6   :  { %892 = vrot.lane.b32.xlu1 %v890_v50, %s1488_s3 }
0x1258   :  { %v893_v52 = vpop.permute.xlu1 %892 }
0x1259   :  { %v895_v53 = vadd.f32 %v893_v52, %v885_v51 }
0x125b   :  { %1450 = vtanh.f32 %v895_v53 }
0x1265   :  { %v1451_v54 = vpop.eup %1450 }
0x1266   :  { %898 = vrot.lane.b32.xlu0 %v1451_v54, %s1488_s3 }
0x12d8   :  { %v899_v55 = vpop.permute.xlu0 %898 }
0x12d9   :  { %v901_v56 = vmul.f32 %v1449_v48, %v899_v55 }
0x12db   :  { %903 = vrot.lane.b32.xlu1 %v901_v56, %s1489_s25 }
0x134d   :  { %v904_v57 = vpop.permute.xlu1 %903 }
0x134e   :  { %906 = vst.msk [vmem:[#allocation3 + $0x30] sm:$0xff] %vm185_vm3, %v904_v57  ;;  %1333 = vmatmul.mubr.msk.f32.vlgmr.msra.gmra.mrb[12].mxu0 %vm185_vm3, %v904_v57 }
0x1355   :  { %v1016_v58 = vld [vmem:[#allocation3 + $0x30] sm:$0xff] }
0x1356   :  { %1348 = vmatprep.mubr.msk.f32.mxu1 %vm185_vm3, %v1016_v58 }
0x1421   :  { %v976_v60 = vpop.f32.mrb[12].mxu0 }
0x1422   :  { %v980_v61 = vadd.f32 %v976_v60, %v907_v59  ;;  %v1334_v62 = vpop.f32.mrb[13].mxu0 }
0x1424   :  { %1452 = vtanh.f32 %v980_v61  ;;  %v1203_v0 = vmul.f32 -1.442695, %v980_v61 }
0x1426   :  { %1454 = vpow2.f32 %v1203_v0 }
0x142e   :  { %v1453_v63 = vpop.eup %1452 }
0x142f   :  { %990 = vrot.lane.b32.xlu0 %v1453_v63, %s1487_s0 }
0x1430   :  { %v1455_v1 = vpop.eup %1454 }
0x1431   :  { %v984_v2 = vadd.f32 1.0, %v1455_v1 }
0x1433   :  { %1456 = vrcp.f32 %v984_v2 }
0x143d   :  { %v1457_v3 = vpop.eup %1456 }
0x143e   :  { %v988_v7 = vmul.f32 %v1457_v3, %v895_v53 }
0x14a1   :  { %v991_v4 = vpop.permute.xlu0 %990 }
0x14a2   :  { %v993_v5 = vmul.f32 %v1457_v3, %v991_v4 }
0x14a4   :  { %995 = vrot.lane.b32.xlu1 %v993_v5, %s1488_s3 }
0x1516   :  { %v996_v8 = vpop.permute.xlu1 %995 }
0x1517   :  { %v998_v9 = vadd.f32 %v996_v8, %v988_v7 }
0x1519   :  { %1458 = vtanh.f32 %v998_v9 }
0x1523   :  { %v1459_v12 = vpop.eup %1458 }
0x1524   :  { %1001 = vrot.lane.b32.xlu0 %v1459_v12, %s1488_s3 }
0x1596   :  { %v1002_v13 = vpop.permute.xlu0 %1001 }
0x1597   :  { %v1004_v11 = vmul.f32 %v1457_v3, %v1002_v13 }
0x1599   :  { %1006 = vrot.lane.b32.xlu1 %v1004_v11, %s1489_s25 }
0x160b   :  { %v1007_v10 = vpop.permute.xlu1 %1006 }
0x160c   :  { %1009 = vst.msk [vmem:[#allocation3 + $0x38] sm:$0xff] %vm185_vm3, %v1007_v10 }
0x1613   :  { %v1017_v14 = vld [vmem:[#allocation3 + $0x38] sm:$0xff] }
0x1614   :  { %1349 = vmatmul.mubr.msk.f32.gmra.mrb[16].mxu1 %vm185_vm3, %v1017_v14 }
0x16e7   :  { %v1350_v15 = vpop.f32.mrb[16].mxu1 }
0x16e8   :  { %v1153_v16 = vadd.f32 %v1350_v15, %v1675_v32  ;;  %v1147_v17 = vpop.f32.mrb[17].mxu1 }
0x16e9   :  { %v1148_v18 = vadd.f32 %v1675_v32, %v1147_v17 }
0x16ea   :  { %1163 = vst [vmem:[#allocation4 + $0x38] sm:$0xff] %v1153_v16 }
0x16eb   :  { %1162 = vst [vmem:[#allocation4 + $0x30] sm:$0xff] %v1148_v18 }
0x16ec   :  { %1471 = shalt.err (!%p1468_p4)
}
0x16ed   :  { %s1472_s1 = scalar_lea.hbm %s1716_s6, 1024 }
0x16ee   :  { %p1473_p5 = scmp.ne.s32.totalorder %s1716_s6, %s1472_s1  ;;  %p1476_p6 = scmp.lt.u32.totalorder %s1472_s1, %s1716_s6 }
0x16f0   :  { %p1478_p7 = pnand %p1476_p6, %p1473_p5 }
0x16f2   :  { %1481 = shalt.err (!%p1478_p7)
}
0x16f3   :  { %s1491_s14 = smov 128   ;;  %s1492_s15 = smov 8  }
0x16f4   :  { %1175 = dma.vmem_to_hbm [thread:$0]  %s1170_s7, 1024, %s1716_s6, [#allocation5], %s1491_s14, %s1491_s14, %s1492_s15  }
0x16f5   :  { %1482 = dma.done.wait [#allocation5], 1024  }
0x16f6   :  { %1483 = vsyncadd [#allocation5], 4294966272 }
0x16f7   :  { %1179 = vsyncpa [#allocation5], 1 }

</bundles_post_ra>
